<compile_context>
chip_gen: v7x
topology: tpu7x:2x2x1
jax: 0.10.0
libtpu: 0.0.40
codegen_flags: <defaults>
</compile_context>

<pallas_src>
import functools

import jax
import jax.numpy as jnp
from jax.experimental import pallas as pl
from jax.experimental.pallas import tpu as pltpu


# ------------------------------ kernel -------------------------------------

def _neg_scale_kernel(g_ref, o_ref, *, neg_lamb):
    # Backward of GradRevFunction: out = -lamb * grad.
    # neg_lamb is a Python float (weak-typed), so the multiply stays in the
    # gradient's native dtype (no upcast traffic); HBM-bound either way.
    o_ref[...] = g_ref[...] * neg_lamb


# --------------------------- tiling helpers ---------------------------------

_SUBLANE = 8
_BLOCK_BYTES_TARGET = 8 * 1024 * 1024     # per block buffer (amortizes grid overhead)
_VMEM_LIMIT_BYTES = 48 * 1024 * 1024      # 2 in + 2 out 8 MiB buffers + headroom,
                                          # below v7x's 64 MiB physical VMEM.
_MIN_PALLAS_BYTES = 1 * 1024 * 1024       # below this, let XLA fuse the multiply
_WIDTHS = (4096, 2048, 1024, 512, 256, 128)   # wide -> narrow lane candidates


def _sublane_multiple(itemsize):
    # 8 for f32, 16 for bf16, 32 for int8/fp8: keeps sublane-packed rows aligned.
    return max(_SUBLANE, (_SUBLANE * 4) // max(1, itemsize))


def _choose_2d(n, smul):
    """Pick a (rows, W) lane-dense 2D view of an n-element tensor (no copies).

    Prefers the widest W (multiple of 128) that still leaves rows >= 2*smul so
    the grid can have >= 2 sublane-aligned row-tiles. Returns None if n has no
    128-multiple divisor (ragged) -> caller falls back to fused XLA.
    """
    fallback = None
    for w in _WIDTHS:
        if n % w == 0:
            rows = n // w
            if rows >= 2 * smul:
                return rows, w
            fallback = (rows, w)          # ends at the narrowest divisor (max rows)
    return fallback                        # may be None (ragged)


def _row_tile(rows, w, itemsize, smul):
    """Row-tile: multiple of smul, ~_BLOCK_BYTES_TARGET per buffer, and >= 2
    grid steps whenever rows allows it (v7x two-TensorCore sharding)."""
    t = max(smul, (_BLOCK_BYTES_TARGET // (w * itemsize)) // smul * smul)
    if t >= rows:
        if rows >= 2 * smul:
            # Split into >= 2 sublane-aligned tiles so both TCs get work and the
            # DMA <-> VPU pipeline has something to overlap.
            t = (rows // 2) // smul * smul
        else:
            t = rows                       # block dim == full dim -> always legal
    return t


# --------------------------- pallas wrapper ---------------------------------

def _neg_scale(g, lamb, *, force_pallas=False):
    """Compute -lamb * g, using a Pallas kernel for large lane-dense tensors."""
    neg_lamb = -float(lamb)
    n = g.size
    if n == 0:
        return g
    dtype = g.dtype
    itemsize = jnp.dtype(dtype).itemsize

    # Small-tensor escape hatch: a standalone kernel would force a dedicated
    # 2n-byte HBM pass; XLA fuses this multiply into the op producing g instead.
    if not force_pallas and n * itemsize < _MIN_PALLAS_BYTES:
        return g * neg_lamb

    smul = _sublane_multiple(itemsize)
    view = _choose_2d(n, smul)
    if view is None:
        # Ragged (no 128-multiple divisor): masked sub-128-lane stores would
        # dominate; a fused XLA multiply is both faster and safer.
        return g * neg_lamb

    rows, w = view
    tile_r = _row_tile(rows, w, itemsize, smul)
    grid = (pl.cdiv(rows, tile_r),)

    kernel = functools.partial(_neg_scale_kernel, neg_lamb=neg_lamb)

    g2d = g.reshape(rows, w)               # free contiguous reshape, no padding
    y2d = pl.pallas_call(
        kernel,
        out_shape=jax.ShapeDtypeStruct((rows, w), dtype),
        grid=grid,
        in_specs=[pl.BlockSpec((tile_r, w), lambda i: (i, 0))],
        out_specs=pl.BlockSpec((tile_r, w), lambda i: (i, 0)),
        # Reuse the incoming cotangent buffer for the output when XLA can donate it.
        input_output_aliases={0: 0},
        # Advisory: memory-bound elementwise op (one read + one write pass).
        cost_estimate=pl.CostEstimate(
            flops=n, transcendentals=0, bytes_accessed=2 * n * itemsize),
        compiler_params=pltpu.CompilerParams(
            dimension_semantics=("parallel",),
            vmem_limit_bytes=_VMEM_LIMIT_BYTES),
    )(g2d)
    return y2d.reshape(g.shape)


# ------------------------- GradRevLayer equivalent --------------------------

@functools.partial(jax.custom_vjp, nondiff_argnums=(1,))
def grad_rev(x, lamb=1.0):
    # Forward of GradRevFunction is x.view_as(x): a pure no-op. Returning x
    # directly keeps the forward free (no HBM pass) and lets XLA fuse around it.
    return x


def _grad_rev_fwd(x, lamb):
    return x, None


def _grad_rev_bwd(lamb, _res, g):
    return (_neg_scale(g, lamb),)


grad_rev.defvjp(_grad_rev_fwd, _grad_rev_bwd)


class GradRevLayer:
    """JAX/Pallas counterpart of the PyTorch GradRevLayer.

    NOTE: `lamb` is a static (nondiff) Python float; passing a traced array as
    lamb will retrace per value (same restriction nondiff_argnums implies).
    """

    def __init__(self, lamb=1):
        self.lamb = float(lamb)

    def __call__(self, x):
        return grad_rev(x, self.lamb)


# --------------------------------- main --------------------------------------

if __name__ == "__main__":
    key = jax.random.PRNGKey(0)
    # NCHW input, same convention as the PyTorch module.
    x = jax.random.normal(key, (2, 4, 16, 16), dtype=jnp.float32)

    layer = GradRevLayer(lamb=1.0)

    # Forward: identity (no kernel launched, zero extra HBM traffic).
    y = jax.block_until_ready(layer(x))
    assert y.shape == x.shape and y.dtype == x.dtype
    assert bool(jnp.all(y == x)), "forward must be identity"

    # Backward at module-sized shape (below the fusion threshold -> fused XLA).
    g = jax.block_until_ready(jax.grad(lambda a: jnp.sum(layer(a) * 2.0))(x))
    assert jnp.allclose(g, -2.0 * jnp.ones_like(x)), "backward must reverse grads"

    # Non-unit lamb.
    layer2 = GradRevLayer(lamb=0.5)
    g2 = jax.block_until_ready(jax.grad(lambda a: jnp.sum(layer2(a)))(x))
    assert jnp.allclose(g2, -0.5 * jnp.ones_like(x)), "lamb scaling incorrect"

    # Exercise the Pallas backward path itself on a small lane-dense gradient
    # (force_pallas bypasses the small-tensor fusion escape hatch).
    kg = jax.random.normal(jax.random.PRNGKey(1), (2, 4, 16, 512), jnp.float32)
    out = jax.block_until_ready(_neg_scale(kg, 0.25, force_pallas=True))
    assert jnp.allclose(out, -0.25 * kg, rtol=1e-6, atol=1e-6), "pallas path wrong"

    # bf16 gradient through the Pallas path (native-dtype multiply).
    kg_bf = kg.astype(jnp.bfloat16)
    out_bf = jax.block_until_ready(_neg_scale(kg_bf, 0.5, force_pallas=True))
    assert jnp.allclose(out_bf.astype(jnp.float32),
                        (-0.5 * kg_bf).astype(jnp.float32)), "bf16 pallas path wrong"

    print("KERNEL_OK")
</pallas_src>

<mosaic_0001>
module attributes {stable_mosaic.version = 11 : i64} {
  func.func @_neg_scale_kernel(%arg0: i32, %arg1: memref<8x4096xf32, #tpu.memory_space<vmem>>, %arg2: memref<8x4096xf32, #tpu.memory_space<vmem>>) attributes {dimension_semantics = [#tpu.dimension_semantics<parallel>], iteration_bounds = array<i64: 2>, scalar_prefetch = 0 : i64, scratch_operands = 0 : i64, tpu.core_type = #tpu.core_type<tc>, window_params = [{transform_indices = @transform_0, window_bounds = array<i64: 8, 4096>}, {transform_indices = @transform_1, window_bounds = array<i64: 8, 4096>}]} {
    %c0 = arith.constant 0 : index
    %c0_0 = arith.constant 0 : index
    %0 = vector.load %arg1[%c0, %c0_0] : memref<8x4096xf32, #tpu.memory_space<vmem>>, vector<8x4096xf32>
    %cst = arith.constant -2.500000e-01 : f32
    %1 = vector.broadcast %cst : f32 to vector<8x4096xf32>
    %2 = arith.mulf %0, %1 : vector<8x4096xf32>
    %c0_1 = arith.constant 0 : index
    %c0_2 = arith.constant 0 : index
    %3 = vector.load %arg2[%c0_1, %c0_2] : memref<8x4096xf32, #tpu.memory_space<vmem>>, vector<8x4096xf32>
    tpu.vector_store %arg2[%c0_1, %c0_2], %2 {strides = array<i32>} : memref<8x4096xf32, #tpu.memory_space<vmem>>, vector<8x4096xf32>,
    return
  }
  func.func @transform_0(%arg0: i32) -> (i32, i32) {
    %c0_i32 = arith.constant 0 : i32
    %c0_i32_0 = arith.constant 0 : i32
    return %arg0, %c0_i32 : i32, i32
  }
  func.func @transform_1(%arg0: i32) -> (i32, i32) {
    %c0_i32 = arith.constant 0 : i32
    %c0_i32_0 = arith.constant 0 : i32
    return %arg0, %c0_i32 : i32, i32
  }
}

</mosaic_0001>

<bundles_post_ra>
// kernel: tpu_custom_call.1
= control target key start
LH: loop header
LB: loop body
LE: loop exit
PB: predicated region body
PF: predicated region fallthrough
CT: control target
= control target key end

     0   :  { %6 = vsyncpa [#allocation3], 0  ;;  %s720_s0 = inlined_call_operand.hbm [shape: f32[16,4096], index: 0, kind: input, shape index: {}, may-alias: {0,1}]   ;;  %s721_s1 = inlined_call_operand.hbm [shape: f32[16,4096], index: 1, kind: output, shape index: {}, may-alias: {0,1}]  }
   0x1   :  { %8 = vsyncpa [#allocation3 + $0x1], 0 }
   0x2   :  { %9 = vsyncpa [#allocation4], 0 }
   0x3   :  { %11 = vsyncpa [#allocation4 + $0x1], 0  ;;  %s486_s6 = smov 0   ;;  %s488_s7 = smov 0  }
   0x4   :  { %s490_s8 = smov 0   ;;  %s492_s9 = smov 0  }
   0x5 LB: > { %s507_s10 = sadd.s32 4294967295, %s472_s9   ;;  %s314_s11 = sadd.s32 4294967294, %s472_s9   ;;  %s472_s9 = sphi %s492_s9, %s736_s9   ;;  %s468_s8 = sphi %s490_s8, %s735_s8   ;;  %s464_s7 = sphi %s488_s7, %s734_s7   ;;  %s460_s6 = sphi %s486_s6, %s733_s6  }
   0x6   : > { %s511_s12 = sadd.s32 1, %s472_s9   ;;  %s24_s13 = sadd.s32 1, %s468_s8 }
   0x7   : > { %s21_s14 = ssub.s32 %s472_s9, %s511_s12  ;;  %p31_p0 = scmp.ne.s32.totalorder %s468_s8, %s464_s7 }
   0x8   : > { %p22_p1 = scmp.eq.s32.totalorder %s21_s14, 0  ;;  %p32_p2 = scmp.eq.s32.totalorder %s472_s9, 0 }
   0x9   : > { %p37_p3 = scmp.ne.s32.totalorder %s464_s7, %s460_s6  ;;  %p38_p4 = scmp.eq.s32.totalorder %s507_s10, 0 }
   0xa   : > { %s523_s15 = scalar_select %p22_p1, %s468_s8, %s24_s13  }
   0xb   : > { %p525_p5 = por %p32_p2, %p31_p0  ;;  %p529_p6 = por %p38_p4, %p37_p3 }
   0xc   : > { %p61_p7 = scmp.eq.s32.totalorder %s507_s10, 1  ;;  %p67_p8 = scmp.eq.s32.totalorder %s314_s11, 1 }
   0xd   : > { %p342_p10 = scmp.lt.s32.totalorder %s472_s9, 2  ;;  %s87_s20 = sand.u32 1, %s468_s8  }
   0xe   : > { %p536_p11 = por %p61_p7, %p31_p0  ;;  %p540_p12 = por %p67_p8, %p37_p3 }
   0xf   : > { %s328_s21 = sshll.u32 %s472_s9, 12  ;;  %s317_s22 = sshll.u32 %s87_s20, 8 }
  0x10   : > { %s725_s18 = scalar_select %p536_p11, 1, 0 }
  0x11   : > { %s726_s19 = scalar_select %p540_p12, 1, 0 }
  0x12   : > { %s549_s25 = scalar_lea.hbm %s720_s0, %s328_s21  ;;  %s91_s26 = scalar_lea.vmem [#allocation2], %s317_s22 }
  0x13   : > { %s99_s27 = sshll.u32 %s91_s26, 4  ;;  %p553_p13 = pnand %p342_p10, %p525_p5  ;;  %s557_s27 = int_to_ptr.vmem [resolvable:$true] %s99_s27 }
  0x14   : > { %s88_s29 = scalar_lea.sflag [#allocation3], %s87_s20  ;;  %s376_s30 = scalar_lea.hbm %s549_s25, 4096 }
  0x15   : > { %p377_p2 = scmp.ne.s32.totalorder %s549_s25, %s376_s30  ;;  %p378_p3 = pneg %p553_p13 }
  0x16   : > { %s381_s4 = scalar_lea.hbm %s720_s0, 8192  ;;  %p382_p5 = scmp.lt.u32.totalorder %s549_s25, %s720_s0 }
  0x17   : > { %p379_p4 = pnand %p378_p3, %p377_p2  ;;  %p383_p8 = scmp.lt.u32.totalorder %s381_s4, %s376_s30 }
  0x18   : > { %p385_p9 = scmp.lt.u32.totalorder %s376_s30, %s549_s25 }
  0x19   : > { %p380_p7 = pneg %p379_p4  ;;  %p384_p10 = por %p383_p8, %p382_p5 }
  0x1b   : > { %p386_p0 = por %p385_p9, %p384_p10 }
  0x1d   : > { %p387_p1 = pnand %p386_p0, %p380_p7 }
  0x1f   : > { %390 = shalt.err (!%p387_p1)
}
  0x20   : > { %s391_s13 = scalar_lea.vmem %s557_s27, 4096  ;;  %s474_s14 = smov [#allocation2]  }
  0x21   : > { %p392_p2 = scmp.ne.s32.totalorder %s557_s27, %s391_s13  ;;  %s396_s16 = sshll.u32 %s474_s14, 4  ;;  %s397_s16 = int_to_ptr.vmem [resolvable:$false] %s396_s16 }
  0x22   : > { %s398_s20 = scalar_lea.vmem %s397_s16, 8192  ;;  %p399_p11 = scmp.lt.s32.totalorder %s557_s27, %s397_s16 }
  0x23   : > { %p394_p4 = pnand %p392_p2, %p378_p3  ;;  %p400_p5 = scmp.lt.s32.totalorder %s398_s20, %s391_s13 }
  0x25   : > { %p395_p12 = pneg %p394_p4  ;;  %p401_p8 = por %p400_p5, %p399_p11 }
  0x27   : > { %p402_p9 = pnand %p401_p8, %p395_p12 }
  0x29   : > { %405 = shalt.err (!%p402_p9)
}
  0x2a   : > { %337 = dma.hbm_to_vmem [thread:$0]  (!%p553_p13), %s549_s25, 4096, %s557_s27, %s88_s29  }
  0x2b   : > { %p728_p0 = scmp.lt.s32.totalorder %s472_s9, 3  ;;  %p729_p1 = scmp.ge.s32.totalorder %s472_s9, 1 }
  0x2d   : > { %p105_p3 = pnand %p729_p1, %p728_p0 }
  0x2e   : > { %s591_s21 = sand.u32 (!%p105_p3), 1, %s464_s7  }
  0x2f   : > { %108 = sbr.rel (%p105_p3) target bundleno = 94 (0x5e), region = 24  ;;  %s321_s22 = sshll.u32 (!%p105_p3), %s591_s21, 8 }
  0x30   : > { %s111_s23 = scalar_lea.sflag (!%p105_p3), [#allocation3], %s591_s21  ;;  %s595_s24 = scalar_lea.vmem (!%p105_p3), [#allocation2], %s321_s22 }
  0x36   : > { %451 = dma.done.wait (%p529_p6), %s111_s23, 4096  }
  0x37   : > { %453 = vsyncadd (%p529_p6), %s111_s23, 4294963200  ;;  %v133_v0 = vld [vmem:[%s595_s24] sm:$0xff]  ;;  %v134_v1 = vld [vmem:[%s595_s24 + $0x8] sm:$0xff]  ;;  %s329_s25 = sshll.u32 %s507_s10, 12  ;;  %s605_s26 = scalar_lea.vmem [#allocation5], %s321_s22 }
  0x38   : > { %v135_v2 = vld [vmem:[%s595_s24 + $0x10] sm:$0xff]  ;;  %s244_s17 = sshll.u32 %s605_s26, 4  ;;  %v165_v3 = vmul.f32 -0.25, %v133_v0  ;;  %v166_v4 = vmul.f32 -0.25, %v134_v1  ;;  %v136_v6 = vld [vmem:[%s595_s24 + $0x18] sm:$0xff]  ;;  %v137_v7 = vld [vmem:[%s595_s24 + $0x20] sm:$0xff]  ;;  %s669_s29 = scalar_lea.hbm %s721_s1, %s329_s25  ;;  %s673_s17 = int_to_ptr.vmem [resolvable:$true] %s244_s17 }
  0x39   : > { %v167_v5 = vmul.f32 -0.25, %v135_v2  ;;  %v138_v8 = vld [vmem:[%s595_s24 + $0x28] sm:$0xff]  ;;  %v168_v9 = vmul.f32 -0.25, %v136_v6  ;;  %v169_v10 = vmul.f32 -0.25, %v137_v7  ;;  %v139_v12 = vld [vmem:[%s595_s24 + $0x30] sm:$0xff]  ;;  %v140_v13 = vld [vmem:[%s595_s24 + $0x38] sm:$0xff] }
  0x3a   : > { %v170_v11 = vmul.f32 -0.25, %v138_v8  ;;  %v141_v14 = vld [vmem:[%s595_s24 + $0x40] sm:$0xff]  ;;  %197 = vst [vmem:[%s605_s26] sm:$0xff] %v165_v3  ;;  %198 = vst [vmem:[%s605_s26 + $0x8] sm:$0xff] %v166_v4  ;;  %v171_v15 = vmul.f32 -0.25, %v139_v12  ;;  %v172_v16 = vmul.f32 -0.25, %v140_v13  ;;  %v142_v18 = vld [vmem:[%s595_s24 + $0x48] sm:$0xff] }
  0x3b   : > { %199 = vst [vmem:[%s605_s26 + $0x10] sm:$0xff] %v167_v5  ;;  %v173_v17 = vmul.f32 -0.25, %v141_v14  ;;  %v143_v19 = vld [vmem:[%s595_s24 + $0x50] sm:$0xff]  ;;  %v144_v20 = vld [vmem:[%s595_s24 + $0x58] sm:$0xff]  ;;  %200 = vst [vmem:[%s605_s26 + $0x18] sm:$0xff] %v168_v9  ;;  %v174_v21 = vmul.f32 -0.25, %v142_v18 }
  0x3c   : > { %201 = vst [vmem:[%s605_s26 + $0x20] sm:$0xff] %v169_v10  ;;  %202 = vst [vmem:[%s605_s26 + $0x28] sm:$0xff] %v170_v11  ;;  %v175_v22 = vmul.f32 -0.25, %v143_v19  ;;  %v176_v23 = vmul.f32 -0.25, %v144_v20  ;;  %v145_v24 = vld [vmem:[%s595_s24 + $0x60] sm:$0xff]  ;;  %v146_v25 = vld [vmem:[%s595_s24 + $0x68] sm:$0xff] }
  0x3d   : > { %v147_v26 = vld [vmem:[%s595_s24 + $0x70] sm:$0xff]  ;;  %203 = vst [vmem:[%s605_s26 + $0x30] sm:$0xff] %v171_v15  ;;  %204 = vst [vmem:[%s605_s26 + $0x38] sm:$0xff] %v172_v16  ;;  %v177_v27 = vmul.f32 -0.25, %v145_v24  ;;  %v178_v28 = vmul.f32 -0.25, %v146_v25  ;;  %v148_v30 = vld [vmem:[%s595_s24 + $0x78] sm:$0xff] }
  0x3e   : > { %205 = vst [vmem:[%s605_s26 + $0x40] sm:$0xff] %v173_v17  ;;  %v179_v29 = vmul.f32 -0.25, %v147_v26  ;;  %v149_v31 = vld [vmem:[%s595_s24 + $0x80] sm:$0xff]  ;;  %v150_v32 = vld [vmem:[%s595_s24 + $0x88] sm:$0xff]  ;;  %206 = vst [vmem:[%s605_s26 + $0x48] sm:$0xff] %v174_v21  ;;  %v180_v33 = vmul.f32 -0.25, %v148_v30 }
  0x3f   : > { %207 = vst [vmem:[%s605_s26 + $0x50] sm:$0xff] %v175_v22  ;;  %208 = vst [vmem:[%s605_s26 + $0x58] sm:$0xff] %v176_v23  ;;  %v181_v34 = vmul.f32 -0.25, %v149_v31  ;;  %v182_v35 = vmul.f32 -0.25, %v150_v32  ;;  %v151_v36 = vld [vmem:[%s595_s24 + $0x90] sm:$0xff]  ;;  %v152_v37 = vld [vmem:[%s595_s24 + $0x98] sm:$0xff] }
  0x40   : > { %v153_v38 = vld [vmem:[%s595_s24 + $0xa0] sm:$0xff]  ;;  %209 = vst [vmem:[%s605_s26 + $0x60] sm:$0xff] %v177_v27  ;;  %210 = vst [vmem:[%s605_s26 + $0x68] sm:$0xff] %v178_v28  ;;  %v183_v39 = vmul.f32 -0.25, %v151_v36  ;;  %v184_v40 = vmul.f32 -0.25, %v152_v37  ;;  %v154_v42 = vld [vmem:[%s595_s24 + $0xa8] sm:$0xff] }
  0x41   : > { %211 = vst [vmem:[%s605_s26 + $0x70] sm:$0xff] %v179_v29  ;;  %v185_v41 = vmul.f32 -0.25, %v153_v38  ;;  %v155_v43 = vld [vmem:[%s595_s24 + $0xb0] sm:$0xff]  ;;  %v156_v44 = vld [vmem:[%s595_s24 + $0xb8] sm:$0xff]  ;;  %212 = vst [vmem:[%s605_s26 + $0x78] sm:$0xff] %v180_v33  ;;  %v186_v45 = vmul.f32 -0.25, %v154_v42 }
  0x42   : > { %213 = vst [vmem:[%s605_s26 + $0x80] sm:$0xff] %v181_v34  ;;  %214 = vst [vmem:[%s605_s26 + $0x88] sm:$0xff] %v182_v35  ;;  %v187_v46 = vmul.f32 -0.25, %v155_v43  ;;  %v188_v47 = vmul.f32 -0.25, %v156_v44  ;;  %v157_v48 = vld [vmem:[%s595_s24 + $0xc0] sm:$0xff]  ;;  %v158_v49 = vld [vmem:[%s595_s24 + $0xc8] sm:$0xff] }
  0x43   : > { %v159_v50 = vld [vmem:[%s595_s24 + $0xd0] sm:$0xff]  ;;  %215 = vst [vmem:[%s605_s26 + $0x90] sm:$0xff] %v183_v39  ;;  %216 = vst [vmem:[%s605_s26 + $0x98] sm:$0xff] %v184_v40  ;;  %v189_v51 = vmul.f32 -0.25, %v157_v48  ;;  %v190_v52 = vmul.f32 -0.25, %v158_v49  ;;  %v160_v54 = vld [vmem:[%s595_s24 + $0xd8] sm:$0xff] }
  0x44   : > { %217 = vst [vmem:[%s605_s26 + $0xa0] sm:$0xff] %v185_v41  ;;  %v191_v53 = vmul.f32 -0.25, %v159_v50  ;;  %v161_v55 = vld [vmem:[%s595_s24 + $0xe0] sm:$0xff]  ;;  %v162_v56 = vld [vmem:[%s595_s24 + $0xe8] sm:$0xff]  ;;  %218 = vst [vmem:[%s605_s26 + $0xa8] sm:$0xff] %v186_v45  ;;  %v192_v57 = vmul.f32 -0.25, %v160_v54 }
  0x45   : > { %219 = vst [vmem:[%s605_s26 + $0xb0] sm:$0xff] %v187_v46  ;;  %220 = vst [vmem:[%s605_s26 + $0xb8] sm:$0xff] %v188_v47  ;;  %v193_v58 = vmul.f32 -0.25, %v161_v55  ;;  %v194_v59 = vmul.f32 -0.25, %v162_v56  ;;  %v163_v60 = vld [vmem:[%s595_s24 + $0xf0] sm:$0xff]  ;;  %v164_v61 = vld [vmem:[%s595_s24 + $0xf8] sm:$0xff] }
  0x46   : > { %221 = vst [vmem:[%s605_s26 + $0xc0] sm:$0xff] %v189_v51  ;;  %222 = vst [vmem:[%s605_s26 + $0xc8] sm:$0xff] %v190_v52  ;;  %v195_v62 = vmul.f32 -0.25, %v163_v60  ;;  %v196_v63 = vmul.f32 -0.25, %v164_v61  ;;  %s230_s30 = scalar_lea.sflag [#allocation4], %s591_s21  ;;  %s406_s2 = scalar_lea.vmem %s673_s17, 4096 }
  0x47   : > { %223 = vst [vmem:[%s605_s26 + $0xd0] sm:$0xff] %v191_v53  ;;  %224 = vst [vmem:[%s605_s26 + $0xd8] sm:$0xff] %v192_v57  ;;  %p407_p6 = scmp.ne.s32.totalorder %s673_s17, %s406_s2  ;;  %p730_p11 = scmp.ne.s32.totalorder %s725_s18, 0 }
  0x48   : > { %225 = vst [vmem:[%s605_s26 + $0xe0] sm:$0xff] %v193_v58  ;;  %226 = vst [vmem:[%s605_s26 + $0xe8] sm:$0xff] %v194_v59  ;;  %s475_s10 = smov [#allocation5]  }
  0x49   : > { %227 = vst [vmem:[%s605_s26 + $0xf0] sm:$0xff] %v195_v62  ;;  %228 = vst [vmem:[%s605_s26 + $0xf8] sm:$0xff] %v196_v63  ;;  %p408_p12 = pnand %p407_p6, %p730_p11  ;;  %s410_s3 = sshll.u32 %s475_s10, 4  ;;  %s411_s3 = int_to_ptr.vmem [resolvable:$false] %s410_s3 }
  0x4a   : > { %s412_s4 = scalar_lea.vmem %s411_s3, 8192  ;;  %p413_p7 = scmp.lt.s32.totalorder %s673_s17, %s411_s3 }
  0x4b   : > { %p409_p13 = pneg %p408_p12  ;;  %p414_p10 = scmp.lt.s32.totalorder %s412_s4, %s406_s2 }
  0x4d   : > { %p415_p2 = por %p414_p10, %p413_p7 }
  0x4f   : > { %p416_p4 = pnand %p415_p2, %p409_p13 }
  0x51   : > { %419 = shalt.err (!%p416_p4)
}
  0x52   : > { %s420_s5 = scalar_lea.hbm %s669_s29, 4096  ;;  %s424_s14 = scalar_lea.hbm %s721_s1, 8192 }
  0x53   : > { %p421_p5 = scmp.ne.s32.totalorder %s669_s29, %s420_s5  ;;  %p425_p0 = scmp.lt.u32.totalorder %s669_s29, %s721_s1 }
  0x54   : > { %p426_p1 = scmp.lt.u32.totalorder %s424_s14, %s420_s5  ;;  %p428_p6 = scmp.lt.u32.totalorder %s420_s5, %s669_s29 }
  0x55   : > { %p422_p8 = pnand %p421_p5, %p730_p11 }
  0x56   : > { %p427_p3 = por %p426_p1, %p425_p0 }
  0x57   : > { %p423_p9 = pneg %p422_p8 }
  0x58   : > { %p429_p12 = por %p428_p6, %p427_p3 }
  0x5a   : > { %p430_p13 = pnand %p429_p12, %p423_p9 }
  0x5c   : > { %433 = shalt.err (!%p430_p13)
}
  0x5d   : > { %332 = dma.vmem_to_hbm [thread:$0]  (%p730_p11), %s673_s17, 4096, %s669_s29, %s230_s30  }
  0x5e PF: > { %s256_s21 = sand.u32 1, %s460_s6   ;;  %p731_p7 = scmp.ne.s32.totalorder %s726_s19, 0 }
  0x5f   : > { %p732_p10 = scmp.ge.s32.totalorder %s472_s9, 2  ;;  %s257_s22 = scalar_lea.sflag [#allocation4], %s256_s21 }
  0x61   : > { %p339_p2 = pnand %p732_p10, %p731_p7 }
  0x63   : > { %455 = dma.done.wait (!%p339_p2), %s257_s22, 4096  }
  0x64   : > { %457 = vsyncadd (!%p339_p2), %s257_s22, 4294963200  ;;  %p14_p4 = scmp.ge.s32.totalorder %s511_s12, 4   ;;  %s733_s6 = smov %s464_s7 }
  0x65   : > { %s734_s7 = smov %s468_s8  ;;  %s735_s8 = smov %s523_s15 }
  0x66   : > { %s736_s9 = smov %s511_s12  ;;  %16 = sbr.rel (!%p14_p4) target bundleno = 5 (0x5), region = 69 }
  0x6d   :  { %262 = vsyncpa [#allocation3], 1 }
  0x6e   :  { %264 = vsyncpa [#allocation3 + $0x1], 1 }
  0x6f   :  { %265 = vsyncpa [#allocation4], 1 }
  0x70   :  { %267 = vsyncpa [#allocation4 + $0x1], 1 }

</bundles_post_ra>
